<compile_context>
chip_gen: v7x
topology: tpu7x:2x2x1
jax: 0.10.0
libtpu: 0.0.40
codegen_flags: <defaults>
</compile_context>

<pallas_src>
import jax
import jax.numpy as jnp
from jax import lax
from jax.experimental import pallas as pl
from jax.experimental.pallas import tpu as pltpu


def _bert_emb_kernel(ids_ref,       # SMEM (n_pad,) int32   scalar-prefetched token ids
                     word_ref,      # HBM  (V, H)           word-embedding table (pl.ANY)
                     pos_ref,       # VMEM (S_pad, H)       position table (resident)
                     ttm_ref,       # VMEM (TQ, 1) f32      token-type ids of this tile
                     ttab_ref,      # VMEM (T, H)           token-type table (resident)
                     gamma_ref,     # VMEM (1, H) f32       LayerNorm gamma
                     beta_ref,      # VMEM (1, H) f32       LayerNorm beta
                     o_ref,         # VMEM (TQ, H)          output tile
                     wbuf_ref,      # VMEM (2*TQ, H)        double-buffered gathered word rows
                     sem_ref):      # DMA semaphores, shape (2,)
    b = pl.program_id(0)
    j = pl.program_id(1)
    nq = pl.num_programs(1)
    TQ, H = o_ref.shape

    def start_gather(tile, slot):
        base = tile * TQ
        dst0 = slot * TQ
        def body(r, carry):
            rid = ids_ref[base + r]
            pltpu.make_async_copy(
                word_ref.at[pl.ds(rid, 1), :],
                wbuf_ref.at[pl.ds(dst0 + r, 1), :],
                sem_ref.at[slot]).start()
            return carry
        lax.fori_loop(0, TQ, body, 0)

    def wait_gather(slot):
        dst0 = slot * TQ
        def body(r, carry):
            # Descriptor only needs matching byte count: one (1, H) row per issued copy.
            pltpu.make_async_copy(
                word_ref.at[pl.ds(0, 1), :],
                wbuf_ref.at[pl.ds(dst0 + r, 1), :],
                sem_ref.at[slot]).wait()
            return carry
        lax.fori_loop(0, TQ, body, 0)

    slot = j & 1

    @pl.when(j == 0)                     # prime the pipeline at the start of every sequence
    def _():
        start_gather(b * nq, 0)

    @pl.when(j + 1 < nq)                 # prefetch next tile of this sequence into other slot
    def _():
        start_gather(b * nq + j + 1, 1 - slot)

    wait_gather(slot)                    # rows of the current tile are now in VMEM

    woff = pl.multiple_of(slot * TQ, TQ)
    poff = pl.multiple_of(j * TQ, TQ)
    x = (wbuf_ref[pl.ds(woff, TQ), :].astype(jnp.float32)
         + pos_ref[pl.ds(poff, TQ), :].astype(jnp.float32))

    # Token-type embedding: tiny VPU select over the resident table (T is typically 2).
    ttm = ttm_ref[...]
    ttab = ttab_ref[...].astype(jnp.float32)
    for t in range(ttab.shape[0]):
        sel = (ttm == float(t)).astype(jnp.float32)
        x = x + sel * ttab[t:t + 1, :]

    mean = jnp.mean(x, axis=-1, keepdims=True)
    var = jnp.mean((x - mean) ** 2, axis=-1, keepdims=True)   # biased var, matches torch LN
    xn = (x - mean) * lax.rsqrt(var + 1e-12)
    o_ref[...] = (xn * gamma_ref[...] + beta_ref[...]).astype(o_ref.dtype)


def _pick_tq(s_pad, cap=512):
    """Largest multiple-of-8 divisor of s_pad (s_pad is itself a multiple of 8), <= cap."""
    best = 8
    t = 8
    while t <= min(cap, s_pad):
        if s_pad % t == 0:
            best = t
        t += 8
    return best


def bert_embeddings(input_ids, token_type_ids, word_emb, pos_emb, type_emb,
                    ln_gamma, ln_beta):
    B, S = input_ids.shape
    V, H = word_emb.shape
    P = pos_emb.shape[0]
    T = type_emb.shape[0]
    assert S <= P, "sequence length exceeds max_position_embeddings"

    out_dtype = word_emb.dtype
    # Per-row DMA gather is done at >=32-bit granularity; upcast sub-32-bit word tables.
    # TODO(synk): true bf16 row gather via u32 row-pair packing (pltpu.bitcast) not implemented.
    word_tab = word_emb if jnp.dtype(word_emb.dtype).itemsize >= 4 else word_emb.astype(jnp.float32)

    S_pad = ((S + 7) // 8) * 8
    TQ = _pick_tq(S_pad)
    nq = S_pad // TQ
    n_pad = B * S_pad
    assert S_pad % TQ == 0

    ids = input_ids.astype(jnp.int32)
    tt = (jnp.zeros_like(ids) if token_type_ids is None
          else token_type_ids.astype(jnp.int32))
    if S_pad != S:
        # Padded tokens gather word row 0 / type 0; their outputs are sliced off below.
        ids = jnp.pad(ids, ((0, 0), (0, S_pad - S)))
        tt = jnp.pad(tt, ((0, 0), (0, S_pad - S)))
    ids_flat = ids.reshape(n_pad)
    ttm = tt.reshape(n_pad, 1).astype(jnp.float32)

    pos_tab = pos_emb[:S_pad] if S_pad <= P else jnp.pad(pos_emb, ((0, S_pad - P), (0, 0)))
    gamma2d = ln_gamma.reshape(1, H).astype(jnp.float32)
    beta2d = ln_beta.reshape(1, H).astype(jnp.float32)

    w_isz = jnp.dtype(word_tab.dtype).itemsize
    o_isz = jnp.dtype(out_dtype).itemsize
    p_isz = jnp.dtype(pos_tab.dtype).itemsize
    cost = pl.CostEstimate(
        flops=int(10 * n_pad * H),
        transcendentals=int(n_pad),
        bytes_accessed=int(n_pad * H * (w_isz + o_isz)
                           + S_pad * H * p_isz + T * H * p_isz + n_pad * (4 + 8)),
    )

    out_flat = pl.pallas_call(
        _bert_emb_kernel,
        out_shape=jax.ShapeDtypeStruct((n_pad, H), out_dtype),
        grid_spec=pltpu.PrefetchScalarGridSpec(
            num_scalar_prefetch=1,
            grid=(B, nq),
            in_specs=[
                pl.BlockSpec(memory_space=pl.ANY),                              # word table (HBM)
                pl.BlockSpec((S_pad, H), lambda b, j, ids_s: (0, 0)),           # pos table, resident
                pl.BlockSpec((TQ, 1), lambda b, j, ids_s: (b * nq + j, 0)),     # token-type ids
                pl.BlockSpec((T, H), lambda b, j, ids_s: (0, 0)),               # type table, resident
                pl.BlockSpec((1, H), lambda b, j, ids_s: (0, 0)),               # gamma
                pl.BlockSpec((1, H), lambda b, j, ids_s: (0, 0)),               # beta
            ],
            out_specs=pl.BlockSpec((TQ, H), lambda b, j, ids_s: (b * nq + j, 0)),
            scratch_shapes=[
                pltpu.VMEM((2 * TQ, H), word_tab.dtype),                        # gather double-buffer
                pltpu.SemaphoreType.DMA((2,)),
            ],
        ),
        compiler_params=pltpu.CompilerParams(
            dimension_semantics=("parallel", "arbitrary")),
        cost_estimate=cost,
    )(ids_flat, word_tab, pos_tab, ttm, type_emb, gamma2d, beta2d)

    return out_flat.reshape(B, S_pad, H)[:, :S, :]


def reference(input_ids, token_type_ids, word_emb, pos_emb, type_emb, ln_gamma, ln_beta):
    B, S = input_ids.shape
    if token_type_ids is None:
        token_type_ids = jnp.zeros_like(input_ids)
    we = jnp.take(word_emb.astype(jnp.float32), input_ids, axis=0)
    pe = pos_emb.astype(jnp.float32)[:S][None, :, :]
    te = jnp.take(type_emb.astype(jnp.float32), token_type_ids, axis=0)
    x = we + pe + te
    mean = jnp.mean(x, axis=-1, keepdims=True)
    var = jnp.mean((x - mean) ** 2, axis=-1, keepdims=True)
    xn = (x - mean) * lax.rsqrt(var + 1e-12)
    return xn * ln_gamma.astype(jnp.float32) + ln_beta.astype(jnp.float32)


def _run_case(key, *, vocab, H, P, T, B, S, table_dtype, use_tt, atol):
    k1, k2, k3, k4, k5, k6 = jax.random.split(key, 6)
    word = 0.02 * jax.random.normal(k1, (vocab, H), jnp.float32)
    word = word.at[0].set(0.0).astype(table_dtype)     # padding_idx=0 row is zero-initialized
    pos = (0.02 * jax.random.normal(k2, (P, H), jnp.float32)).astype(table_dtype)
    typ = (0.02 * jax.random.normal(k3, (T, H), jnp.float32)).astype(table_dtype)
    gamma = 1.0 + 0.01 * jax.random.normal(k4, (H,), jnp.float32)
    beta = 0.01 * jax.random.normal(k5, (H,), jnp.float32)
    ids = jax.random.randint(k6, (B, S), 0, vocab, dtype=jnp.int32)
    tt = (ids % T).astype(jnp.int32) if use_tt else None

    out = bert_embeddings(ids, tt, word, pos, typ, gamma, beta)
    out = jax.block_until_ready(out)
    ref = reference(ids, tt, word, pos, typ, gamma, beta)

    assert out.shape == (B, S, H), out.shape
    assert out.dtype == table_dtype, out.dtype
    assert jnp.allclose(out.astype(jnp.float32), ref, atol=atol, rtol=0), (
        f"mismatch: max abs err {jnp.max(jnp.abs(out.astype(jnp.float32) - ref))}")


if __name__ == "__main__":
    root = jax.random.PRNGKey(0)
    k_a, k_b, k_c = jax.random.split(root, 3)
    # f32 tables, S a multiple of 8, explicit token_type_ids
    _run_case(k_a, vocab=100, H=128, P=32, T=2, B=2, S=8,
              table_dtype=jnp.float32, use_tt=True, atol=1e-5)
    # f32 tables, S NOT a multiple of 8 (exercises the padded tail) + token_type_ids=None path
    _run_case(k_b, vocab=100, H=128, P=32, T=2, B=2, S=12,
              table_dtype=jnp.float32, use_tt=False, atol=1e-5)
    # bf16 tables: pos/type/output streams stay bf16; word rows gathered at f32 (see TODO)
    _run_case(k_c, vocab=100, H=128, P=32, T=2, B=2, S=16,
              table_dtype=jnp.bfloat16, use_tt=True, atol=5e-2)
    print("KERNEL_OK")
</pallas_src>

<mosaic_0001>
module attributes {stable_mosaic.version = 11 : i64} {
  func.func @_bert_emb_kernel(%arg0: i32, %arg1: i32, %arg2: memref<16xi32, #tpu.memory_space<smem>>, %arg3: memref<100x128xf32, #tpu.memory_space<any>>, %arg4: memref<8x128xf32, #tpu.memory_space<vmem>>, %arg5: memref<8x1xf32, #tpu.memory_space<vmem>>, %arg6: memref<2x128xf32, #tpu.memory_space<vmem>>, %arg7: memref<1x128xf32, #tpu.memory_space<vmem>>, %arg8: memref<1x128xf32, #tpu.memory_space<vmem>>, %arg9: memref<8x128xf32, #tpu.memory_space<vmem>>, %arg10: memref<16x128xf32, #tpu.memory_space<vmem>>, %arg11: memref<2x!tpu.dma_semaphore, #tpu.memory_space<semaphore_mem>>) attributes {dimension_semantics = [#tpu.dimension_semantics<parallel>, #tpu.dimension_semantics<arbitrary>], iteration_bounds = array<i64: 2, 1>, scalar_prefetch = 1 : i64, scratch_operands = 2 : i64, tpu.core_type = #tpu.core_type<tc>, window_params = [{}, {pipeline_mode = #tpu.pipeline_mode<synchronous>, transform_indices = @transform_1, window_bounds = array<i64: 8, 128>}, {transform_indices = @transform_2, window_bounds = array<i64: 8, 1>}, {pipeline_mode = #tpu.pipeline_mode<synchronous>, transform_indices = @transform_3, window_bounds = array<i64: 2, 128>}, {pipeline_mode = #tpu.pipeline_mode<synchronous>, transform_indices = @transform_4, window_bounds = array<i64: 1, 128>}, {pipeline_mode = #tpu.pipeline_mode<synchronous>, transform_indices = @transform_5, window_bounds = array<i64: 1, 128>}, {transform_indices = @transform_6, window_bounds = array<i64: 8, 128>}]} {
    %c1_i32 = arith.constant 1 : i32
    %0 = arith.andi %arg1, %c1_i32 : i32
    %c0_i32 = arith.constant 0 : i32
    %1 = arith.cmpi eq, %arg1, %c0_i32 : i32
    %2 = arith.extui %1 : i1 to i32
    %c0_i32_0 = arith.constant 0 : i32
    %3 = arith.cmpi ne, %2, %c0_i32_0 : i32
    scf.if %3 {
      %c1_i32_27 = arith.constant 1 : i32
      %64 = arith.muli %arg0, %c1_i32_27 : i32
      %c8_i32_28 = arith.constant 8 : i32
      %65 = arith.muli %64, %c8_i32_28 : i32
      %c0_i32_29 = arith.constant 0 : i32
      %c8_i32_30 = arith.constant 8 : i32
      %66 = arith.addi %c0_i32_29, %c8_i32_30 : i32
      %c1_i32_31 = arith.constant 1 : i32
      scf.for %arg12 = %c0_i32_29 to %66 step %c1_i32_31  : i32 {
        %67 = arith.addi %65, %arg12 : i32
        %68 = arith.index_cast %67 : i32 to index
        %69 = memref.load %arg2[%68] : memref<16xi32, #tpu.memory_space<smem>>
        %c0_i32_33 = arith.constant 0 : i32
        %70 = arith.addi %c0_i32_33, %arg12 : i32
        %c0_i32_34 = arith.constant 0 : i32
        %c0_i32_35 = arith.constant 0 : i32
        %71 = tpu.memref_slice %arg3[%69, %c0_i32_35] : memref<100x128xf32, #tpu.memory_space<any>> -> memref<1x128xf32, #tpu.memory_space<any>>
        %c0_i32_36 = arith.constant 0 : i32
        %72 = tpu.memref_slice %arg10[%70, %c0_i32_36] : memref<16x128xf32, #tpu.memory_space<vmem>> -> memref<1x128xf32, #tpu.memory_space<vmem>>
        %73 = tpu.memref_slice %arg11[%c0_i32_34] : memref<2x!tpu.dma_semaphore, #tpu.memory_space<semaphore_mem>> -> memref<1x!tpu.dma_semaphore, #tpu.memory_space<semaphore_mem>>
        %74 = tpu.memref_squeeze %73 : memref<1x!tpu.dma_semaphore, #tpu.memory_space<semaphore_mem>> -> memref<!tpu.dma_semaphore, #tpu.memory_space<semaphore_mem>>
        tpu.enqueue_dma source(%71 : memref<1x128xf32, #tpu.memory_space<any>>) target(%72 : memref<1x128xf32, #tpu.memory_space<vmem>>) target_semaphore(%74 : memref<!tpu.dma_semaphore, #tpu.memory_space<semaphore_mem>>)
      }
      %c8_i32_32 = arith.constant 8 : i32
    } else {
    }
    %c1_i32_1 = arith.constant 1 : i32
    %4 = arith.addi %arg1, %c1_i32_1 : i32
    %c1_i32_2 = arith.constant 1 : i32
    %5 = arith.cmpi slt, %4, %c1_i32_2 : i32
    %6 = arith.extui %5 : i1 to i32
    %c0_i32_3 = arith.constant 0 : i32
    %7 = arith.cmpi ne, %6, %c0_i32_3 : i32
    scf.if %7 {
      %c1_i32_27 = arith.constant 1 : i32
      %64 = arith.muli %arg0, %c1_i32_27 : i32
      %65 = arith.addi %64, %arg1 : i32
      %c1_i32_28 = arith.constant 1 : i32
      %66 = arith.addi %65, %c1_i32_28 : i32
      %c1_i32_29 = arith.constant 1 : i32
      %67 = arith.subi %c1_i32_29, %0 : i32
      %c8_i32_30 = arith.constant 8 : i32
      %68 = arith.muli %66, %c8_i32_30 : i32
      %c8_i32_31 = arith.constant 8 : i32
      %69 = arith.muli %67, %c8_i32_31 : i32
      %c0_i32_32 = arith.constant 0 : i32
      %c8_i32_33 = arith.constant 8 : i32
      %70 = arith.addi %c0_i32_32, %c8_i32_33 : i32
      %c1_i32_34 = arith.constant 1 : i32
      scf.for %arg12 = %c0_i32_32 to %70 step %c1_i32_34  : i32 {
        %71 = arith.addi %68, %arg12 : i32
        %72 = arith.index_cast %71 : i32 to index
        %73 = memref.load %arg2[%72] : memref<16xi32, #tpu.memory_space<smem>>
        %74 = arith.addi %69, %arg12 : i32
        %c0_i32_36 = arith.constant 0 : i32
        %75 = tpu.memref_slice %arg3[%73, %c0_i32_36] : memref<100x128xf32, #tpu.memory_space<any>> -> memref<1x128xf32, #tpu.memory_space<any>>
        %c0_i32_37 = arith.constant 0 : i32
        %76 = tpu.memref_slice %arg10[%74, %c0_i32_37] : memref<16x128xf32, #tpu.memory_space<vmem>> -> memref<1x128xf32, #tpu.memory_space<vmem>>
        %77 = tpu.memref_slice %arg11[%67] : memref<2x!tpu.dma_semaphore, #tpu.memory_space<semaphore_mem>> -> memref<1x!tpu.dma_semaphore, #tpu.memory_space<semaphore_mem>>
        %78 = tpu.memref_squeeze %77 : memref<1x!tpu.dma_semaphore, #tpu.memory_space<semaphore_mem>> -> memref<!tpu.dma_semaphore, #tpu.memory_space<semaphore_mem>>
        tpu.enqueue_dma source(%75 : memref<1x128xf32, #tpu.memory_space<any>>) target(%76 : memref<1x128xf32, #tpu.memory_space<vmem>>) target_semaphore(%78 : memref<!tpu.dma_semaphore, #tpu.memory_space<semaphore_mem>>)
      }
      %c8_i32_35 = arith.constant 8 : i32
    } else {
    }
    %c8_i32 = arith.constant 8 : i32
    %8 = arith.muli %0, %c8_i32 : i32
    %c0_i32_4 = arith.constant 0 : i32
    %c8_i32_5 = arith.constant 8 : i32
    %9 = arith.addi %c0_i32_4, %c8_i32_5 : i32
    %c1_i32_6 = arith.constant 1 : i32
    scf.for %arg12 = %c0_i32_4 to %9 step %c1_i32_6  : i32 {
      %64 = arith.addi %8, %arg12 : i32
      %c0_i32_27 = arith.constant 0 : i32
      %c0_i32_28 = arith.constant 0 : i32
      %65 = tpu.memref_slice %arg3[%c0_i32_27, %c0_i32_28] : memref<100x128xf32, #tpu.memory_space<any>> -> memref<1x128xf32, #tpu.memory_space<any>>
      %c0_i32_29 = arith.constant 0 : i32
      %66 = tpu.memref_slice %arg10[%64, %c0_i32_29] : memref<16x128xf32, #tpu.memory_space<vmem>> -> memref<1x128xf32, #tpu.memory_space<vmem>>
      %67 = tpu.memref_slice %arg11[%0] : memref<2x!tpu.dma_semaphore, #tpu.memory_space<semaphore_mem>> -> memref<1x!tpu.dma_semaphore, #tpu.memory_space<semaphore_mem>>
      %68 = tpu.memref_squeeze %67 : memref<1x!tpu.dma_semaphore, #tpu.memory_space<semaphore_mem>> -> memref<!tpu.dma_semaphore, #tpu.memory_space<semaphore_mem>>
      tpu.wait_dma2 semaphore(%68 : memref<!tpu.dma_semaphore, #tpu.memory_space<semaphore_mem>>) src(%65 : memref<1x128xf32, #tpu.memory_space<any>>) dst(%66 : memref<1x128xf32, #tpu.memory_space<vmem>>)
    }
    %c8_i32_7 = arith.constant 8 : i32
    %c8_i32_8 = arith.constant 8 : i32
    %10 = arith.muli %0, %c8_i32_8 : i32
    %11 = tpu.assume_multiple %10, 8 : i32
    %c8_i32_9 = arith.constant 8 : i32
    %12 = arith.muli %arg1, %c8_i32_9 : i32
    %13 = tpu.assume_multiple %12, 8 : i32
    %14 = arith.index_cast %11 : i32 to index
    %c0 = arith.constant 0 : index
    %15 = vector.load %arg10[%14, %c0] : memref<16x128xf32, #tpu.memory_space<vmem>>, vector<8x128xf32>
    %16 = arith.index_cast %13 : i32 to index
    %c0_10 = arith.constant 0 : index
    %17 = vector.load %arg4[%16, %c0_10] : memref<8x128xf32, #tpu.memory_space<vmem>>, vector<8x128xf32>
    %18 = arith.addf %15, %17 : vector<8x128xf32>
    %c0_11 = arith.constant 0 : index
    %c0_12 = arith.constant 0 : index
    %19 = vector.load %arg5[%c0_11, %c0_12] : memref<8x1xf32, #tpu.memory_space<vmem>>, vector<8x1xf32>
    %c0_13 = arith.constant 0 : index
    %c0_14 = arith.constant 0 : index
    %20 = vector.load %arg6[%c0_13, %c0_14] : memref<2x128xf32, #tpu.memory_space<vmem>>, vector<2x128xf32>
    %cst = arith.constant 0.000000e+00 : f32
    %21 = vector.broadcast %cst : f32 to vector<8x1xf32>
    %22 = arith.cmpf oeq, %19, %21 : vector<8x1xf32>
    %23 = arith.extui %22 : vector<8x1xi1> to vector<8x1xi32>
    %24 = arith.sitofp %23 : vector<8x1xi32> to vector<8x1xf32>
    %25 = vector.extract_strided_slice %20 {offsets = [0, 0], sizes = [1, 128], strides = [1, 1]} : vector<2x128xf32> to vector<1x128xf32>
    %26 = vector.broadcast %24 : vector<8x1xf32> to vector<8x128xf32>
    %27 = vector.broadcast %25 : vector<1x128xf32> to vector<8x128xf32>
    %28 = arith.mulf %26, %27 : vector<8x128xf32>
    %29 = arith.addf %18, %28 : vector<8x128xf32>
    %cst_15 = arith.constant 1.000000e+00 : f32
    %30 = vector.broadcast %cst_15 : f32 to vector<8x1xf32>
    %31 = arith.cmpf oeq, %19, %30 : vector<8x1xf32>
    %32 = arith.extui %31 : vector<8x1xi1> to vector<8x1xi32>
    %33 = arith.sitofp %32 : vector<8x1xi32> to vector<8x1xf32>
    %34 = vector.extract_strided_slice %20 {offsets = [1, 0], sizes = [1, 128], strides = [1, 1]} : vector<2x128xf32> to vector<1x128xf32>
    %35 = vector.broadcast %33 : vector<8x1xf32> to vector<8x128xf32>
    %36 = vector.broadcast %34 : vector<1x128xf32> to vector<8x128xf32>
    %37 = arith.mulf %35, %36 : vector<8x128xf32>
    %38 = arith.addf %29, %37 : vector<8x128xf32>
    %cst_16 = arith.constant dense<0.000000e+00> : vector<8xf32>
    %39 = vector.multi_reduction <add>, %38, %cst_16 [1] : vector<8x128xf32> to vector<8xf32>
    %40 = vector.shape_cast %39 : vector<8xf32> to vector<8x1xf32>
    %cst_17 = arith.constant 1.280000e+02 : f32
    %41 = vector.broadcast %cst_17 : f32 to vector<8x1xf32>
    %42 = arith.divf %40, %41 : vector<8x1xf32>
    %43 = vector.broadcast %42 : vector<8x1xf32> to vector<8x128xf32>
    %44 = arith.subf %38, %43 : vector<8x128xf32>
    %45 = arith.mulf %44, %44 : vector<8x128xf32>
    %cst_18 = arith.constant dense<0.000000e+00> : vector<8xf32>
    %46 = vector.multi_reduction <add>, %45, %cst_18 [1] : vector<8x128xf32> to vector<8xf32>
    %47 = vector.shape_cast %46 : vector<8xf32> to vector<8x1xf32>
    %cst_19 = arith.constant 1.280000e+02 : f32
    %48 = vector.broadcast %cst_19 : f32 to vector<8x1xf32>
    %49 = arith.divf %47, %48 : vector<8x1xf32>
    %50 = vector.broadcast %42 : vector<8x1xf32> to vector<8x128xf32>
    %51 = arith.subf %38, %50 : vector<8x128xf32>
    %cst_20 = arith.constant 9.99999996E-13 : f32
    %52 = vector.broadcast %cst_20 : f32 to vector<8x1xf32>
    %53 = arith.addf %49, %52 : vector<8x1xf32>
    %54 = math.rsqrt %53 : vector<8x1xf32>
    %55 = vector.broadcast %54 : vector<8x1xf32> to vector<8x128xf32>
    %56 = arith.mulf %51, %55 : vector<8x128xf32>
    %c0_21 = arith.constant 0 : index
    %c0_22 = arith.constant 0 : index
    %57 = vector.load %arg7[%c0_21, %c0_22] : memref<1x128xf32, #tpu.memory_space<vmem>>, vector<1x128xf32>
    %58 = vector.broadcast %57 : vector<1x128xf32> to vector<8x128xf32>
    %59 = arith.mulf %56, %58 : vector<8x128xf32>
    %c0_23 = arith.constant 0 : index
    %c0_24 = arith.constant 0 : index
    %60 = vector.load %arg8[%c0_23, %c0_24] : memref<1x128xf32, #tpu.memory_space<vmem>>, vector<1x128xf32>
    %61 = vector.broadcast %60 : vector<1x128xf32> to vector<8x128xf32>
    %62 = arith.addf %59, %61 : vector<8x128xf32>
    %c0_25 = arith.constant 0 : index
    %c0_26 = arith.constant 0 : index
    %63 = vector.load %arg9[%c0_25, %c0_26] : memref<8x128xf32, #tpu.memory_space<vmem>>, vector<8x128xf32>
    tpu.vector_store %arg9[%c0_25, %c0_26], %62 {strides = array<i32>} : memref<8x128xf32, #tpu.memory_space<vmem>>, vector<8x128xf32>,
    return
  }
  func.func @transform_1(%arg0: i32, %arg1: i32, %arg2: memref<16xi32, #tpu.memory_space<smem>>) -> (i32, i32) {
    %c0_i32 = arith.constant 0 : i32
    %c0_i32_0 = arith.constant 0 : i32
    %c0_i32_1 = arith.constant 0 : i32
    return %c0_i32, %c0_i32_0 : i32, i32
  }
  func.func @transform_2(%arg0: i32, %arg1: i32, %arg2: memref<16xi32, #tpu.memory_space<smem>>) -> (i32, i32) {
    %c1_i32 = arith.constant 1 : i32
    %0 = arith.muli %arg0, %c1_i32 : i32
    %1 = arith.addi %0, %arg1 : i32
    %c0_i32 = arith.constant 0 : i32
    %c0_i32_0 = arith.constant 0 : i32
    return %1, %c0_i32 : i32, i32
  }
  func.func @transform_3(%arg0: i32, %arg1: i32, %arg2: memref<16xi32, #tpu.memory_space<smem>>) -> (i32, i32) {
    %c0_i32 = arith.constant 0 : i32
    %c0_i32_0 = arith.constant 0 : i32
    %c0_i32_1 = arith.constant 0 : i32
    return %c0_i32, %c0_i32_0 : i32, i32
  }
  func.func @transform_4(%arg0: i32, %arg1: i32, %arg2: memref<16xi32, #tpu.memory_space<smem>>) -> (i32, i32) {
    %c0_i32 = arith.constant 0 : i32
    %c0_i32_0 = arith.constant 0 : i32
    %c0_i32_1 = arith.constant 0 : i32
    return %c0_i32, %c0_i32_0 : i32, i32
  }
  func.func @transform_5(%arg0: i32, %arg1: i32, %arg2: memref<16xi32, #tpu.memory_space<smem>>) -> (i32, i32) {
    %c0_i32 = arith.constant 0 : i32
    %c0_i32_0 = arith.constant 0 : i32
    %c0_i32_1 = arith.constant 0 : i32
    return %c0_i32, %c0_i32_0 : i32, i32
  }
  func.func @transform_6(%arg0: i32, %arg1: i32, %arg2: memref<16xi32, #tpu.memory_space<smem>>) -> (i32, i32) {
    %c1_i32 = arith.constant 1 : i32
    %0 = arith.muli %arg0, %c1_i32 : i32
    %1 = arith.addi %0, %arg1 : i32
    %c0_i32 = arith.constant 0 : i32
    %c0_i32_0 = arith.constant 0 : i32
    return %1, %c0_i32 : i32, i32
  }
}

</mosaic_0001>

<bundles_post_ra>
// kernel: tpu_custom_call.1
= control target key start
LH: loop header
LB: loop body
LE: loop exit
PB: predicated region body
PF: predicated region fallthrough
CT: control target
= control target key end

     0   :  { %s960_s0 = inlined_call_operand.vmem [shape: s32[16], index: 0, kind: input, shape index: {}]   ;;  %s961_s1 = inlined_call_operand.hbm [shape: f32[100,128], index: 1, kind: input, shape index: {}]   ;;  %s962_s2 = inlined_call_operand.vmem [shape: f32[8,128], index: 2, kind: input, shape index: {}]   ;;  %s963_s3 = inlined_call_operand.vmem [shape: f32[16,1], index: 3, kind: input, shape index: {}]   ;;  %s964_s4 = inlined_call_operand.vmem [shape: f32[2,128], index: 4, kind: input, shape index: {}]   ;;  %s965_s5 = inlined_call_operand.vmem [shape: f32[1,128], index: 5, kind: input, shape index: {}]   ;;  %s966_s6 = inlined_call_operand.vmem [shape: f32[1,128], index: 6, kind: input, shape index: {}]   ;;  %s967_s7 = inlined_call_operand.hbm [shape: f32[16,128], index: 7, kind: output, shape index: {}]  }
   0x1   :  { %971 = sst [smem:[#allocation20_spill]] %s963_s3  ;;  %s12_s26 = sshll.u32 %s960_s0, 4  ;;  %s13_s26 = int_to_ptr.vmem [resolvable:$true] %s12_s26 }
   0x2   :  { %s616_s27 = scalar_lea.vmem %s13_s26, 16  ;;  %p621_p1 = scmp.lt.s32.totalorder %s13_s26, %s13_s26 }
   0x3   :  { %p617_p0 = scmp.ne.s32.totalorder %s13_s26, %s616_s27  ;;  %p622_p2 = scmp.lt.s32.totalorder %s616_s27, %s616_s27 }
   0x5   :  { %p623_p3 = por %p622_p2, %p621_p1 }
   0x7   :  { %p624_p4 = pnand %p623_p3, %p617_p0 }
   0x9   :  { %627 = shalt.err (!%p624_p4)  }
   0xa   :  { %s752_s28 = smov [#allocation5]  }
   0xb   :  { %15 = dma.vmem_to_smem %s13_s26, 16, %s752_s28, [#allocation4] }
   0xc   :  { %712 = dma.done.wait [#allocation4], 16 }
   0xd   :  { %713 = vsyncadd [#allocation4], 4294967280 }
   0xe   :  { %17 = sfence }
   0xf   :  { %18 = vsyncpa [#allocation7], 0 }
  0x10   :  { %20 = vsyncpa [#allocation7 + $0x1], 0  ;;  %s800_s29 = smov 0   ;;  %s802_s30 = smov 0  }
  0x11   :  { %s804_s0 = smov 0   ;;  %s806_s8 = smov 0  }
  0x12   :  { %s808_s9 = smov 0   ;;  %s810_s10 = smov 0  }
  0x13 LB: > { %972 = sst [smem:[#allocation17_spill]] %s738_s9  ;;  %s513_s11 = sadd.s32 4294967295, %s742_s10   ;;  %s742_s10 = sphi %s810_s10, %s26_s10   ;;  %s738_s9 = sphi %s808_s9, %s984_s9   ;;  %s734_s8 = sphi %s806_s8, %s983_s8   ;;  %s730_s0 = sphi %s804_s0, %s987_s0   ;;  %s726_s30 = sphi %s802_s30, %s986_s30   ;;  %s722_s29 = sphi %s800_s29, %s985_s29  }
  0x14   : > { %s514_s12 = sadd.s32 4294967294, %s742_s10   ;;  %s38_s13 = sadd.s32 1, %s738_s9 }
  0x15   : > { %s159_s14 = sadd.s32 1, %s730_s0  ;;  %p40_p5 = scmp.ge.s32.totalorder %s38_s13, 2 }
  0x16   : > { %p169_p6 = scmp.ne.s32.totalorder %s730_s0, %s726_s30  ;;  %p170_p7 = scmp.eq.s32.totalorder %s513_s11, 1 }
  0x17   : > { %p175_p8 = scmp.ne.s32.totalorder %s726_s30, %s722_s29  ;;  %s989_s13 = smov (%p40_p5, %s38_s13), 0 }
  0x18   : > { %973 = sst [smem:[#allocation18_spill]] %s989_s13  ;;  %p840_p9 = por %p170_p7, %p169_p6 }
  0x19   : > { %p176_p10 = scmp.eq.s32.totalorder %s514_s12, 1  ;;  %s156_s16 = ssub.s32 %s738_s9, %s989_s13 }
  0x1a   : > { %p517_p11 = scmp.ge.s32.totalorder %s742_s10, 1  ;;  %p157_p12 = scmp.eq.s32.totalorder %s156_s16, 0 }
  0x1b   : > { %p847_p13 = por %p176_p10, %p175_p8  ;;  %p215_p0 = scmp.lt.s32.totalorder %s742_s10, 3 }
  0x1c   : > { %s853_s18 = scalar_select %p157_p12, %s730_s0, %s159_s14  }
  0x1d   : > { %s975_s17 = scalar_select %p847_p13, 1, 0 }
  0x1e   : > { %976 = sst [smem:[#allocation19_spill]] %s853_s18  ;;  %p216_p1 = pnand %p517_p11, %p215_p0 }
  0x1f   : > { %s968_s19 = sand.u32 (!%p216_p1), 1, %s726_s30   ;;  %p244_p2 = scmp.lt.s32.totalorder (!%p216_p1), %s734_s8, 1 }
  0x20   : > { %219 = sbr.rel (%p216_p1) target bundleno = 550 (0x226), region = 40  ;;  %s859_s20 = sshll.u32 (!%p216_p1), %s968_s19, 3 }
  0x21   : > { %s520_s21 = sshll.u32 (!%p216_p1), %s734_s8, 3  ;;  %s977_s3 = sld [smem:[#allocation20_spill]] (!%p216_p1) }
  0x22   : > { %s869_s28 = smov (!%p216_p1), 0  }
  0x27   : > { %s245_s22 = scalar_select %p244_p2, %s734_s8, 1 }
  0x29   : > { %s519_s23 = sshll.u32 %s245_s22, 3 }
  0x2a   : > { %s866_s26 = scalar_lea.vmem %s977_s3, %s519_s23 }
  0x2b LB: >> { %s262_s11 = sadd.s32 %s746_s28, %s520_s21  ;;  %s266_s14 = scalar_lea.vmem [#allocation2], %s746_s28  ;;  %s746_s28 = sphi %s869_s28, %s261_s28  }
  0x2c   : >> { %s263_s12 = sld [smem:[#allocation5 + %s262_s11]]  ;;  %s274_s16 = sshll.u32 %s266_s14, 4  ;;  %s275_s16 = int_to_ptr.vmem [resolvable:$true] %s274_s16 }
  0x2d   : >> { %s630_s13 = scalar_lea.hbm %s961_s1, 1664 }
  0x32   : >> { %s521_s22 = sshll.u32 %s263_s12, 4 }
  0x33   : >> { %s265_s25 = scalar_lea.hbm %s961_s1, %s521_s22 }
  0x34   : >> { %s628_s19 = scalar_lea.hbm %s265_s25, 16  ;;  %p631_p4 = scmp.lt.u32.totalorder %s265_s25, %s961_s1 }
  0x35   : >> { %p629_p3 = scmp.ne.s32.totalorder %s265_s25, %s628_s19  ;;  %p632_p5 = scmp.lt.u32.totalorder %s630_s13, %s628_s19 }
  0x36   : >> { %p634_p7 = scmp.lt.u32.totalorder %s628_s19, %s265_s25 }
  0x37   : >> { %p633_p6 = por %p632_p5, %p631_p4 }
  0x39   : >> { %p635_p8 = por %p634_p7, %p633_p6 }
  0x3b   : >> { %p636_p10 = pnand %p635_p8, %p629_p3 }
  0x3d   : >> { %639 = shalt.err (!%p636_p10)  }
  0x3e   : >> { %s640_s11 = scalar_lea.vmem %s275_s16, 16  ;;  %s753_s12 = smov [#allocation2]  }
  0x3f   : >> { %p641_p11 = scmp.ne.s32.totalorder %s275_s16, %s640_s11  ;;  %s642_s14 = sshll.u32 %s753_s12, 4  ;;  %s643_s14 = int_to_ptr.vmem [resolvable:$false] %s642_s14 }
  0x40   : >> { %s644_s22 = scalar_lea.vmem %s643_s14, 256  ;;  %p645_p12 = scmp.lt.s32.totalorder %s275_s16, %s643_s14 }
  0x41   : >> { %p646_p0 = scmp.lt.s32.totalorder %s644_s22, %s640_s11 }
  0x43   : >> { %p647_p1 = por %p646_p0, %p645_p12 }
  0x45   : >> { %p648_p2 = pnand %p647_p1, %p641_p11 }
  0x47   : >> { %651 = shalt.err (!%p648_p2)  }
  0x48   : >> { %277 = dma.hbm_to_vmem [thread:$0]  %s265_s25, 16, %s275_s16, [#allocation3] }
  0x49   : >> { %s261_s28 = sadd.s32 1, %s746_s28  }
  0x4a   : >> { %p258_p13 = scmp.ge.s32.totalorder %s261_s28, 8  }
  0x4b   : > { %s748_s3 = smov (%p258_p13), 0  }
  0x4c   : > { %260 = sbr.rel (!%p258_p13) target bundleno = 43 (0x2b), region = 121 }
  0x53 LB: >> { %714 = dma.done.wait [#allocation3], 16  ;;  %s750_s3 = sphi %s748_s3, %s318_s3  }
  0x54   : >> { %715 = vsyncadd [#allocation3], 4294967280  ;;  %s318_s3 = sadd.s32 1, %s750_s3  }
  0x55   : >> { %p315_p3 = scmp.ge.s32.totalorder %s318_s3, 8  }
  0x56   : > { %v329_v0 = vld [vmem:[%s866_s26] sm:$0xff] (%p315_p3)  ;;  %v754_v1 = vmov (%p315_p3), 0   ;;  %v755_v2 = vmov (%p315_p3), 0.0   ;;  %v339_v5 = vlaneseq (%p315_p3)  ;;  %s530_s16 = sshll.u32 (%p315_p3), %s734_s8, 7  ;;  %s978_s23 = scalar_lea.vmem (%p315_p3), [#allocation6], %s859_s20 }
  0x57   : > { %317 = sbr.rel (!%p315_p3) target bundleno = 83 (0x53), region = 143  ;;  %613 = vset.pattern.permute.xlu0 (%p315_p3), %v754_v1  ;;  %vm331_vm0 = vcmp.eq.f32.partialorder (%p315_p3), %v329_v0, 0.0  ;;  %vm345_vm1 = vcmp.eq.f32.partialorder (%p315_p3), %v329_v0, 1.0  ;;  %v330_v8 = vld [vmem:[%s964_s4] sm:$0x3] (%p315_p3)  ;;  %s403_s24 = sshll.u32 (%p315_p3), %s978_s23, 4  ;;  %s911_s24 = int_to_ptr.vmem [resolvable:$true] %s403_s24 }
  0x58   : > { %v525_v3 = vsel (%p315_p3), %vm331_vm0, 1.0, %v755_v2  ;;  %v526_v4 = vsel (%p315_p3), %vm345_vm1, 1.0, %v755_v2  ;;  %v340_v6 = vshrl.u32 (%p315_p3), %v339_v5, 7  ;;  %v325_v11 = vld [vmem:[#allocation2] sm:$0xff] (%p315_p3)  ;;  %s909_s12 = scalar_lea.hbm (%p315_p3), %s967_s7, %s530_s16  ;;  %s979_s14 = smov (%p315_p3), %s978_s23 }
  0x59   : > { %336 = vperm.xlu0 (%p315_p3), %613, %v525_v3   ;;  %v327_v12 = vld [vmem:[%s962_s2] sm:$0xff] (%p315_p3)  ;;  %s980_s22 = sand.u32 (%p315_p3), 1, %s726_s30   ;;  %s652_s9 = scalar_lea.vmem (%p315_p3), %s911_s24, 128 }
  0x5a   : > { %v341_v7 = vsub.s32 (%p315_p3), 0, %v340_v6  ;;  %v355_v10 = vsub.s32 (%p315_p3), 1, %v340_v6  ;;  %v328_v14 = vadd.f32 (%p315_p3), %v327_v12, %v325_v11  ;;  %v527_v29 = vld [vmem:[%s965_s5] ss:$0 sm:$0xff] (%p315_p3)  ;;  %s389_s3 = scalar_lea.sflag (%p315_p3), [#allocation7], %s980_s22  ;;  %p653_p13 = scmp.ne.s32.totalorder (%p315_p3), %s911_s24, %s652_s9 }
  0x5b   : > { %v528_v31 = vld [vmem:[%s966_s6] ss:$0 sm:$0xff] (%p315_p3)  ;;  %s756_s8 = smov (%p315_p3), [#allocation6]  }
  0x5c   : > { %v342_v9 = vrot.slane (%p315_p3), %v330_v8, %v341_v7  ;;  %v356_v16 = vrot.slane (%p315_p3), %v330_v8, %v355_v10  ;;  %p654_p4 = pnand (%p315_p3), %p653_p13, %p840_p9  ;;  %s656_s13 = sshll.u32 (%p315_p3), %s756_s8, 4  ;;  %s657_s13 = int_to_ptr.vmem [resolvable:$false] %s656_s13 }
  0x5d   : > { %350 = vperm.xlu0 (%p315_p3), %613, %v526_v4   ;;  %s658_s18 = scalar_lea.vmem (%p315_p3), %s657_s13, 256  ;;  %p659_p6 = scmp.lt.s32.totalorder (%p315_p3), %s911_s24, %s657_s13 }
  0x5e   : > { %p655_p5 = pneg %p654_p4  ;;  %p660_p7 = scmp.lt.s32.totalorder %s658_s18, %s652_s9 }
  0x60   : > { %p661_p8 = por %p660_p7, %p659_p6 }
  0x62   : > { %p662_p10 = pnand %p661_p8, %p655_p5 }
  0xd8   : > { %v337_v13 = vpop.permute.xlu0 %336 }
  0xd9   : > { %v343_v15 = vmul.f32 %v342_v9, %v337_v13 }
  0xdb   : > { %v344_v18 = vadd.f32 %v343_v15, %v328_v14 }
  0xdc   : > { %v351_v17 = vpop.permute.xlu0 %350 }
  0xdd   : > { %v357_v19 = vmul.f32 %v356_v16, %v351_v17 }
  0xdf   : > { %v358_v20 = vadd.f32 %v357_v19, %v344_v18 }
  0xe1   : > { %359 = vadd.xlane.f32.xlu1 %v358_v20 }
 0x16e   : > { %v360_v21 = vpop.xlane.xlu1 %359 }
 0x16f   : > { %v362_v22 = vmul.f32 0.0078125, %v360_v21 }
 0x171   : > { %v363_v23 = vsub.f32 %v358_v20, %v362_v22 }
 0x173   : > { %v364_v24 = vmul.f32 %v363_v23, %v363_v23 }
 0x175   : > { %365 = vadd.xlane.f32.xlu1 %v364_v24 }
 0x202   : > { %v366_v25 = vpop.xlane.xlu1 %365 }
 0x203   : > { %v367_v26 = vmul.f32 0.0078125, %v366_v25 }
 0x205   : > { %v368_v27 = vadd.f32 1e-12, %v367_v26 }
 0x207   : > { %614 = vrsqrt.f32 %v368_v27 }
 0x211   : > { %v615_v28 = vpop.eup %614 }
 0x212   : > { %v370_v30 = vmul.f32 %v615_v28, %v363_v23 }
 0x214   : > { %v378_v32 = vmul.f32 %v527_v29, %v370_v30 }
 0x216   : > { %v386_v33 = vadd.f32 %v528_v31, %v378_v32 }
 0x218   : > { %387 = vst [vmem:[%s979_s14] sm:$0xff] %v386_v33 }
 0x219   : > { %665 = shalt.err (!%p662_p10)
}
 0x21a   : > { %s666_s20 = scalar_lea.hbm %s909_s12, 128  ;;  %s670_s26 = scalar_lea.hbm %s967_s7, 256 }
 0x21b   : > { %p667_p11 = scmp.ne.s32.totalorder %s909_s12, %s666_s20  ;;  %p671_p1 = scmp.lt.u32.totalorder %s909_s12, %s967_s7 }
 0x21c   : > { %p672_p2 = scmp.lt.u32.totalorder %s670_s26, %s666_s20  ;;  %p674_p13 = scmp.lt.u32.totalorder %s666_s20, %s909_s12 }
 0x21d   : > { %p668_p12 = pnand %p667_p11, %p840_p9 }
 0x21e   : > { %p673_p3 = por %p672_p2, %p671_p1 }
 0x21f   : > { %p669_p0 = pneg %p668_p12 }
 0x220   : > { %p675_p4 = por %p674_p13, %p673_p3 }
 0x222   : > { %p676_p5 = pnand %p675_p4, %p669_p0 }
 0x224   : > { %679 = shalt.err (!%p676_p5)
}
 0x225   : > { %539 = dma.vmem_to_hbm [thread:$0]  (%p840_p9), %s911_s24, 128, %s909_s12, %s389_s3  }
 0x226 PF: > { %p545_p6 = scmp.ge.s32.totalorder %s742_s10, 2  ;;  %s415_s16 = sand.u32 1, %s722_s29  }
 0x227   : > { %p981_p7 = scmp.ne.s32.totalorder %s975_s17, 0  ;;  %s416_s23 = scalar_lea.sflag [#allocation7], %s415_s16 }
 0x229   : > { %p542_p8 = pnand %p545_p6, %p981_p7 }
 0x22b   : > { %717 = dma.done.wait (!%p542_p8), %s416_s23, 128  }
 0x22c   : > { %719 = vsyncadd (!%p542_p8), %s416_s23, 4294967168  ;;  %s26_s10 = sadd.s32 1, %s742_s10   ;;  %s982_s15 = sld [smem:[#allocation19_spill]] }
 0x22d   : > { %p23_p10 = scmp.ge.s32.totalorder %s26_s10, 4   ;;  %s983_s8 = sld [smem:[#allocation17_spill]] }
 0x22e   : > { %s984_s9 = sld [smem:[#allocation18_spill]]  ;;  %s985_s29 = smov %s726_s30 }
 0x22f   : > { %s986_s30 = smov %s730_s0  ;;  %25 = sbr.rel (!%p23_p10) target bundleno = 19 (0x13), region = 154 }
 0x232   : > { %s987_s0 = smov %s982_s15 }
 0x236   :  { %421 = vsyncpa [#allocation7], 1 }
 0x237   :  { %423 = vsyncpa [#allocation7 + $0x1], 1 }
 0x238   :  { %424 = vsyncmov [#allocation3] }
 0x23b   :  { %s425_s17 = vpop.sfrf %424 }
 0x23c   :  { %p533_p9 = scmp.ne.s32.totalorder %s425_s17, 0 }
 0x23e   :  { %429 = shalt.err (%p533_p9)  }
 0x23f   :  { %431 = vsyncmov [#allocation3 + $0x1] }
 0x242   :  { %s432_s24 = vpop.sfrf %431 }
 0x243   :  { %p534_p11 = scmp.ne.s32.totalorder %s432_s24, 0 }
 0x245   :  { %436 = shalt.err (%p534_p11)  }

</bundles_post_ra>
